<compile_context>
chip_gen: v7x
topology: tpu7x:2x2x1
jax: 0.10.0
libtpu: 0.0.40
codegen_flags: <defaults>
</compile_context>

<pallas_src>
import jax
import jax.numpy as jnp
from jax.experimental import pallas as pl
from jax.experimental.pallas import tpu as pltpu


def transition_kernel(x_ref, scale_ref, shift_ref, w_ref, pool_ref, o_ref):
    # x_ref:     (1, Cin, TL)       NCL tile of the input
    # scale_ref: (Cin, 1)           folded BN scale  = gamma / sqrt(var + eps)
    # shift_ref: (Cin, 1)           folded BN shift  = beta  - mean * scale
    # w_ref:     (Cout, Cin)        conv1d k=1 weight, f32
    # pool_ref:  (TL, TL//2)        constant avg-pool matrix (0.5 at (2t,t),(2t+1,t))
    # o_ref:     (1, Cout, TL//2)   NCL tile of the output
    x = x_ref[0].astype(jnp.float32)                       # (Cin, TL), L on lanes

    # BatchNorm (folded, eval mode) + ReLU; (Cin,1) broadcasts inside the VPU op.
    y = jnp.maximum(x * scale_ref[...] + shift_ref[...], 0.0)   # (Cin, TL) f32

    # 1x1 conv == channel matmul, kept in (Cin, TL) orientation -> (Cout, TL).
    z = jnp.dot(w_ref[...], y, preferred_element_type=jnp.float32)

    # AvgPool1d(k=2) as a small constant matmul (no lane shuffles, no transpose).
    pooled = jnp.dot(z, pool_ref[...], preferred_element_type=jnp.float32)

    o_ref[0] = pooled.astype(o_ref.dtype)                  # (Cout, TL//2)


def _estimate_vmem_bytes(cin, cout, tl, in_itemsize, out_itemsize):
    """Rough VMEM footprint: double-buffered blocks + params + f32 intermediates."""
    f32 = 4
    x_blk = cin * tl * in_itemsize * 2                     # double-buffered input
    o_blk = cout * (tl // 2) * out_itemsize * 2            # double-buffered output
    params = cin * f32 * 2 + cout * cin * f32 + tl * (tl // 2) * f32
    inter = (cin * tl            # x cast to f32
             + cin * tl          # y
             + cout * tl         # z
             + cout * (tl // 2)  # pooled
             ) * f32
    return x_blk + o_blk + params + inter


def _pick_length_tile(length, cin, cout, in_itemsize, out_itemsize,
                      target_block_bytes=1 << 20, vmem_budget=20 << 20,
                      max_tile=2048):
    """Length tile: multiple of 256 dividing L (so blocks are (8,128)-legal),
    sized so the input block is ~target_block_bytes and the total VMEM footprint
    stays under vmem_budget.  Falls back to a single full-length tile only when
    that tile is provably small enough."""
    assert length % 2 == 0, "AvgPool1d(kernel_size=2) needs an even length here"
    cands = [t for t in range(256, min(length, max_tile) + 1, 256) if length % t == 0]
    if not cands:
        if _estimate_vmem_bytes(cin, cout, length, in_itemsize, out_itemsize) > vmem_budget:
            raise ValueError(
                "No 256-aligned length tile divides L=%d and a full-length tile "
                "exceeds the VMEM budget; pad L to a multiple of 256." % length)
        return length
    fitting = [t for t in cands
               if _estimate_vmem_bytes(cin, cout, t, in_itemsize, out_itemsize) <= vmem_budget]
    if not fitting:
        fitting = [cands[0]]
    target_tl = max(256, target_block_bytes // max(cin * in_itemsize, 1))
    below = [t for t in fitting if t <= target_tl]
    return max(below) if below else min(fitting)


def transition_forward(x_ncl, gamma, beta, running_mean, running_var, conv_w,
                       eps=1e-5):
    """x_ncl: (N, Cin, L); conv_w: (Cout, Cin, 1) -- PyTorch conventions.

    Returns (N, Cout, L // 2) in the input dtype (NCL, like the PyTorch module).
    """
    N, Cin, L = x_ncl.shape
    Cout = conv_w.shape[0]
    assert L % 2 == 0, "AvgPool1d(kernel_size=2) needs an even length here"

    # Fold BatchNorm1d (eval mode) into a per-channel scale/shift.
    scale = gamma / jnp.sqrt(running_var + eps)                    # (Cin,)
    shift = beta - running_mean * scale                            # (Cin,)
    scale2d = scale.reshape(Cin, 1).astype(jnp.float32)
    shift2d = shift.reshape(Cin, 1).astype(jnp.float32)

    # Conv1d k=1 weight -> (Cout, Cin) f32 matmul weight (tiny).
    w = conv_w[:, :, 0].astype(jnp.float32)                        # (Cout, Cin)

    itemsize = jnp.dtype(x_ncl.dtype).itemsize
    tl = _pick_length_tile(L, Cin, Cout, itemsize, itemsize)
    assert L % tl == 0 and tl % 2 == 0
    grid = (N, L // tl)

    # Constant avg-pool matrix: P[2t, t] = P[2t+1, t] = 0.5.
    rows = jnp.arange(tl)
    cols = jnp.arange(tl // 2)
    pool_mat = ((rows[:, None] // 2) == cols[None, :]).astype(jnp.float32) * 0.5

    # Explicit VMEM budget derived from the real footprint (blocks, params and
    # the f32 intermediates the kernel materializes), capped so it is safe on
    # v7x (64 MiB physical VMEM) while still well above the default scoped limit.
    est = _estimate_vmem_bytes(Cin, Cout, tl, itemsize, itemsize)
    vmem_bytes = int(min(max(est * 2, 16 * 1024 * 1024), 32 * 1024 * 1024))

    out = pl.pallas_call(
        transition_kernel,
        out_shape=jax.ShapeDtypeStruct((N, Cout, L // 2), x_ncl.dtype),
        grid_spec=pltpu.PrefetchScalarGridSpec(
            num_scalar_prefetch=0,
            grid=grid,
            in_specs=[
                pl.BlockSpec((1, Cin, tl), lambda n, lt: (n, 0, lt)),
                pl.BlockSpec((Cin, 1), lambda n, lt: (0, 0)),
                pl.BlockSpec((Cin, 1), lambda n, lt: (0, 0)),
                pl.BlockSpec((Cout, Cin), lambda n, lt: (0, 0)),
                pl.BlockSpec((tl, tl // 2), lambda n, lt: (0, 0)),
            ],
            out_specs=pl.BlockSpec((1, Cout, tl // 2), lambda n, lt: (n, 0, lt)),
        ),
        compiler_params=pltpu.CompilerParams(
            dimension_semantics=("parallel", "parallel"),
            vmem_limit_bytes=vmem_bytes,
        ),
    )(x_ncl, scale2d, shift2d, w, pool_mat)
    return out


def transition_reference(x_ncl, gamma, beta, running_mean, running_var, conv_w,
                         eps=1e-5):
    """Pure-JAX f32 reference (eval-mode BN), matching the PyTorch forward."""
    scale = gamma / jnp.sqrt(running_var + eps)
    shift = beta - running_mean * scale
    y = jnp.maximum(x_ncl * scale[None, :, None] + shift[None, :, None], 0.0)  # (N,Cin,L)
    w = conv_w[:, :, 0]                                                        # (Cout,Cin)
    z = jnp.einsum("oc,ncl->nol", w, y)                                        # conv k=1
    return (z[..., 0::2] + z[..., 1::2]) * 0.5                                 # avg-pool k=2


if __name__ == "__main__":
    # Small shapes consistent with the module: in_planes=16, out_planes=8, L=16.
    N, Cin, Cout, L = 2, 16, 8, 16

    key = jax.random.PRNGKey(0)
    k_x, k_g, k_b, k_m, k_v, k_w = jax.random.split(key, 6)

    x = jax.random.normal(k_x, (N, Cin, L), dtype=jnp.float32)
    gamma = 1.0 + 0.1 * jax.random.normal(k_g, (Cin,), dtype=jnp.float32)
    beta = 0.1 * jax.random.normal(k_b, (Cin,), dtype=jnp.float32)
    running_mean = 0.1 * jax.random.normal(k_m, (Cin,), dtype=jnp.float32)
    running_var = jnp.abs(1.0 + 0.1 * jax.random.normal(k_v, (Cin,), dtype=jnp.float32))
    conv_w = 0.1 * jax.random.normal(k_w, (Cout, Cin, 1), dtype=jnp.float32)

    out = transition_forward(x, gamma, beta, running_mean, running_var, conv_w)
    out = jax.block_until_ready(out)
    assert out.shape == (N, Cout, L // 2), out.shape

    ref = transition_reference(x, gamma, beta, running_mean, running_var, conv_w)
    assert jnp.allclose(out, ref, atol=2e-3, rtol=2e-3), "mismatch vs f32 reference"

    print("KERNEL_OK")
</pallas_src>

<mosaic_0001>
module attributes {stable_mosaic.version = 11 : i64} {
  func.func @transition_kernel(%arg0: i32, %arg1: i32, %arg2: memref<1x16x16xf32, #tpu.memory_space<vmem>>, %arg3: memref<16x1xf32, #tpu.memory_space<vmem>>, %arg4: memref<16x1xf32, #tpu.memory_space<vmem>>, %arg5: memref<8x16xf32, #tpu.memory_space<vmem>>, %arg6: memref<16x8xf32, #tpu.memory_space<vmem>>, %arg7: memref<1x8x8xf32, #tpu.memory_space<vmem>>) attributes {dimension_semantics = [#tpu.dimension_semantics<parallel>, #tpu.dimension_semantics<parallel>], iteration_bounds = array<i64: 2, 1>, scalar_prefetch = 0 : i64, scratch_operands = 0 : i64, tpu.core_type = #tpu.core_type<tc>, window_params = [{transform_indices = @transform_0, window_bounds = array<i64: 1, 16, 16>}, {pipeline_mode = #tpu.pipeline_mode<synchronous>, transform_indices = @transform_1, window_bounds = array<i64: 16, 1>}, {pipeline_mode = #tpu.pipeline_mode<synchronous>, transform_indices = @transform_2, window_bounds = array<i64: 16, 1>}, {pipeline_mode = #tpu.pipeline_mode<synchronous>, transform_indices = @transform_3, window_bounds = array<i64: 8, 16>}, {pipeline_mode = #tpu.pipeline_mode<synchronous>, transform_indices = @transform_4, window_bounds = array<i64: 16, 8>}, {transform_indices = @transform_5, window_bounds = array<i64: 1, 8, 8>}]} {
    %c0 = arith.constant 0 : index
    %c0_0 = arith.constant 0 : index
    %c0_1 = arith.constant 0 : index
    %0 = vector.load %arg2[%c0, %c0_0, %c0_1] : memref<1x16x16xf32, #tpu.memory_space<vmem>>, vector<1x16x16xf32>
    %1 = vector.shape_cast %0 : vector<1x16x16xf32> to vector<16x16xf32>
    %c0_2 = arith.constant 0 : index
    %c0_3 = arith.constant 0 : index
    %2 = vector.load %arg3[%c0_2, %c0_3] : memref<16x1xf32, #tpu.memory_space<vmem>>, vector<16x1xf32>
    %3 = vector.broadcast %2 : vector<16x1xf32> to vector<16x16xf32>
    %4 = arith.mulf %1, %3 : vector<16x16xf32>
    %c0_4 = arith.constant 0 : index
    %c0_5 = arith.constant 0 : index
    %5 = vector.load %arg4[%c0_4, %c0_5] : memref<16x1xf32, #tpu.memory_space<vmem>>, vector<16x1xf32>
    %6 = vector.broadcast %5 : vector<16x1xf32> to vector<16x16xf32>
    %7 = arith.addf %4, %6 : vector<16x16xf32>
    %cst = arith.constant 0.000000e+00 : f32
    %8 = vector.broadcast %cst : f32 to vector<16x16xf32>
    %9 = arith.maximumf %7, %8 : vector<16x16xf32>
    %c0_6 = arith.constant 0 : index
    %c0_7 = arith.constant 0 : index
    %10 = vector.load %arg5[%c0_6, %c0_7] : memref<8x16xf32, #tpu.memory_space<vmem>>, vector<8x16xf32>
    %cst_8 = arith.constant dense<0.000000e+00> : vector<8x16xf32>
    %11 = tpu.matmul %10, %9, %cst_8 {dimension_numbers = #tpu.dot_dimension_numbers<[1], [0], [0], [1], [0, 0, 1, 1], [], []>} : vector<8x16xf32>, vector<16x16xf32>, vector<8x16xf32> -> vector<8x16xf32>
    %c0_9 = arith.constant 0 : index
    %c0_10 = arith.constant 0 : index
    %12 = vector.load %arg6[%c0_9, %c0_10] : memref<16x8xf32, #tpu.memory_space<vmem>>, vector<16x8xf32>
    %cst_11 = arith.constant dense<0.000000e+00> : vector<8x8xf32>
    %13 = tpu.matmul %11, %12, %cst_11 {dimension_numbers = #tpu.dot_dimension_numbers<[1], [0], [0], [1], [0, 0, 1, 1], [], []>} : vector<8x16xf32>, vector<16x8xf32>, vector<8x8xf32> -> vector<8x8xf32>
    %c0_12 = arith.constant 0 : index
    %c0_13 = arith.constant 0 : index
    %c0_14 = arith.constant 0 : index
    %14 = vector.load %arg7[%c0_12, %c0_13, %c0_14] : memref<1x8x8xf32, #tpu.memory_space<vmem>>, vector<1x8x8xf32>
    %15 = vector.shape_cast %14 : vector<1x8x8xf32> to vector<8x8xf32>
    %16 = vector.shape_cast %13 : vector<8x8xf32> to vector<1x8x8xf32>
    tpu.vector_store %arg7[%c0_12, %c0_13, %c0_14], %16 {strides = array<i32>} : memref<1x8x8xf32, #tpu.memory_space<vmem>>, vector<1x8x8xf32>,
    return
  }
  func.func @transform_0(%arg0: i32, %arg1: i32) -> (i32, i32, i32) {
    %c0_i32 = arith.constant 0 : i32
    %c0_i32_0 = arith.constant 0 : i32
    return %arg0, %c0_i32, %arg1 : i32, i32, i32
  }
  func.func @transform_1(%arg0: i32, %arg1: i32) -> (i32, i32) {
    %c0_i32 = arith.constant 0 : i32
    %c0_i32_0 = arith.constant 0 : i32
    %c0_i32_1 = arith.constant 0 : i32
    return %c0_i32, %c0_i32_0 : i32, i32
  }
  func.func @transform_2(%arg0: i32, %arg1: i32) -> (i32, i32) {
    %c0_i32 = arith.constant 0 : i32
    %c0_i32_0 = arith.constant 0 : i32
    %c0_i32_1 = arith.constant 0 : i32
    return %c0_i32, %c0_i32_0 : i32, i32
  }
  func.func @transform_3(%arg0: i32, %arg1: i32) -> (i32, i32) {
    %c0_i32 = arith.constant 0 : i32
    %c0_i32_0 = arith.constant 0 : i32
    %c0_i32_1 = arith.constant 0 : i32
    return %c0_i32, %c0_i32_0 : i32, i32
  }
  func.func @transform_4(%arg0: i32, %arg1: i32) -> (i32, i32) {
    %c0_i32 = arith.constant 0 : i32
    %c0_i32_0 = arith.constant 0 : i32
    %c0_i32_1 = arith.constant 0 : i32
    return %c0_i32, %c0_i32_0 : i32, i32
  }
  func.func @transform_5(%arg0: i32, %arg1: i32) -> (i32, i32, i32) {
    %c0_i32 = arith.constant 0 : i32
    %c0_i32_0 = arith.constant 0 : i32
    return %arg0, %c0_i32, %arg1 : i32, i32, i32
  }
}

</mosaic_0001>

<bundles_post_ra>
// kernel: tpu_custom_call.1
= control target key start
LH: loop header
LB: loop body
LE: loop exit
PB: predicated region body
PF: predicated region fallthrough
CT: control target
= control target key end

     0   :  { %10 = vsyncpa [#allocation3], 0  ;;  %s871_s0 = inlined_call_operand.vmem [shape: f32[2,16,16], index: 0, kind: input, shape index: {}]   ;;  %s872_s1 = inlined_call_operand.vmem [shape: f32[16,1], index: 1, kind: input, shape index: {}]   ;;  %s873_s2 = inlined_call_operand.vmem [shape: f32[16,1], index: 2, kind: input, shape index: {}]   ;;  %s874_s3 = inlined_call_operand.vmem [shape: f32[8,16], index: 3, kind: input, shape index: {}]   ;;  %s875_s4 = inlined_call_operand.vmem [shape: f32[16,8], index: 4, kind: input, shape index: {}]   ;;  %s876_s5 = inlined_call_operand.hbm [shape: f32[2,8,8], index: 5, kind: output, shape index: {}]  }
   0x1   :  { %12 = vsyncpa [#allocation3 + $0x1], 0  ;;  %s738_s18 = smov 0   ;;  %s740_s19 = smov 0  }
   0x2   :  { %s742_s20 = smov 0   ;;  %s744_s21 = smov 0  }
   0x3   :  { %s746_s22 = smov 0   ;;  %s748_s23 = smov 0  }
   0x4 LB: > { %s521_s24 = sadd.s32 4294967295, %s701_s23   ;;  %s522_s25 = sadd.s32 4294967294, %s701_s23   ;;  %s701_s23 = sphi %s748_s23, %s18_s23   ;;  %s697_s22 = sphi %s746_s22, %s883_s22   ;;  %s693_s21 = sphi %s744_s21, %s882_s21   ;;  %s689_s20 = sphi %s742_s20, %s881_s20   ;;  %s685_s19 = sphi %s740_s19, %s880_s19   ;;  %s681_s18 = sphi %s738_s18, %s879_s18  }
   0x5   : > { %s30_s26 = sadd.s32 1, %s697_s22  ;;  %s151_s27 = sadd.s32 1, %s689_s20 }
   0x6   : > { %p32_p0 = scmp.ge.s32.totalorder %s30_s26, 2  ;;  %p161_p1 = scmp.ne.s32.totalorder %s689_s20, %s685_s19 }
   0x7   : > { %p162_p2 = scmp.eq.s32.totalorder %s521_s24, 1  ;;  %p167_p3 = scmp.ne.s32.totalorder %s685_s19, %s681_s18 }
   0x8   : > { %s885_s26 = smov (%p32_p0, %s30_s26), 0  ;;  %p168_p5 = scmp.eq.s32.totalorder %s522_s25, 1 }
   0x9   : > { %p778_p4 = por %p162_p2, %p161_p1  ;;  %s146_s29 = ssub.s32 %s697_s22, %s885_s26 }
   0xa   : > { %p525_p6 = scmp.ge.s32.totalorder %s701_s23, 1  ;;  %p149_p7 = scmp.eq.s32.totalorder %s146_s29, 0 }
   0xb   : > { %p785_p8 = por %p168_p5, %p167_p3  ;;  %p209_p9 = scmp.lt.s32.totalorder %s701_s23, 3 }
   0xc   : > { %s791_s6 = scalar_select %p149_p7, %s689_s20, %s151_s27  }
   0xd   : > { %p210_p10 = pnand %p525_p6, %p209_p9 }
   0xe   : > { %v264_v0 = vld [vmem:[%s873_s2] sm:$0xff] (!%p210_p10)  ;;  %v703_v2 = vmov (!%p210_p10), 0   ;;  %v265_v3 = vld [vmem:[%s873_s2 + $0x8] sm:$0xff] (!%p210_p10)  ;;  %v704_v5 = vmov (!%p210_p10), 0.0|0.0   ;;  %vm705_vm0 = vmmov (!%p210_p10), 0   ;;  %v706_v6 = vmov (!%p210_p10), 0.0  }
   0xf   : > { %213 = sbr.rel (%p210_p10) target bundleno = 597 (0x255), region = 40  ;;  %v250_v1 = vld [vmem:[%s872_s1] sm:$0xff] (!%p210_p10)  ;;  %622 = vset.pattern.permute.xlu1 (!%p210_p10), %v703_v2  ;;  %621 = vset.pattern.permute.xlu0 (!%p210_p10), %v703_v2  ;;  %v251_v4 = vld [vmem:[%s872_s1 + $0x8] sm:$0xff] (!%p210_p10)  ;;  %p240_p11 = scmp.lt.s32.totalorder (!%p210_p10), %s693_s21, 1  ;;  %vm281_vm1 = vcmask (!%p210_p10), 130048   ;;  %vm430_vm2 = vcmask (!%p210_p10), 64512  }
  0x10   : > { %268 = vperm.xlu1 (!%p210_p10), %622, %v264_v0   ;;  %254 = vperm.xlu0 (!%p210_p10), %621, %v250_v1   ;;  %v355_v7 = vld [vmem:[%s875_s4] sm:$0xff] (!%p210_p10)  ;;  %v356_v8 = vld [vmem:[%s875_s4 + $0x8] sm:$0xff] (!%p210_p10)  ;;  %s237_s11 = sand.u32 (!%p210_p10), 1, %s685_s19   ;;  %s532_s13 = sshll.u32 (!%p210_p10), %s693_s21, 7 }
  0x11   : > { %556 = vmatprep.subr.bf16.mxu0 (!%p210_p10), %v704_v5  ;;  %559 = vmatprep.subr.bf16.mxu1 (!%p210_p10), %v704_v5  ;;  %v560_v9 = vpack.c.bf16 (!%p210_p10), %v356_v8, %v355_v7  ;;  %v280_v23 = vld [vmem:[%s874_s3] sm:$0xff] (!%p210_p10)  ;;  %s526_s12 = sshll.u32 (!%p210_p10), %s237_s11, 3  ;;  %s824_s24 = scalar_lea.hbm (!%p210_p10), %s876_s5, %s532_s13 }
  0x12   : > { %546 = vmatprep.mubr.msk.f32.mxu0 (!%p210_p10), %vm705_vm0, %v706_v6  ;;  %553 = vmatprep.mubr.msk.f32.mxu1 (!%p210_p10), %vm705_vm0, %v706_v6  ;;  %s239_s14 = scalar_lea.vmem (!%p210_p10), [#allocation2], %s526_s12 }
  0x13   : > { %561 = vmatpush3.bf16.msra.mxu1 (!%p210_p10), %v560_v9  ;;  %s447_s15 = sshll.u32 (!%p210_p10), %s239_s14, 4  ;;  %s826_s15 = int_to_ptr.vmem [resolvable:$true] %s447_s15 }
  0x14   : > { %273 = vperm.xlu1 (!%p210_p10), %622, %v265_v3   ;;  %259 = vperm.xlu0 (!%p210_p10), %621, %v251_v4  }
  0x16   : > { %s241_s25 = scalar_select %p240_p11, %s693_s21, 1 }
  0x17   : > { %s707_s21 = smov [#allocation2]  }
  0x18   : > { %s535_s27 = sshll.u32 %s241_s25, 4  ;;  %s433_s25 = scalar_lea.sflag [#allocation3], %s237_s11 }
  0x19   : > { %s247_s8 = scalar_lea.vmem %s871_s0, %s535_s27  ;;  %s623_s27 = scalar_lea.vmem %s826_s15, 128 }
  0x1a   : > { %v248_v10 = vld [vmem:[%s247_s8] sm:$0xff]  ;;  %v249_v14 = vld [vmem:[%s247_s8 + $0x8] sm:$0xff]  ;;  %p624_p12 = scmp.ne.s32.totalorder %s826_s15, %s623_s27  ;;  %s627_s29 = sshll.u32 %s707_s21, 4  ;;  %s628_s29 = int_to_ptr.vmem [resolvable:$false] %s627_s29 }
  0x1b   : > { %s629_s7 = scalar_lea.vmem %s628_s29, 256  ;;  %p630_p1 = scmp.lt.s32.totalorder %s826_s15, %s628_s29 }
  0x1c   : > { %p625_p13 = pnand %p624_p12, %p778_p4  ;;  %p631_p2 = scmp.lt.s32.totalorder %s629_s7, %s623_s27 }
  0x1e   : > { %p626_p0 = pneg %p625_p13  ;;  %p632_p3 = por %p631_p2, %p630_p1 }
  0x20   : > { %p633_p5 = pnand %p632_p3, %p626_p0 }
  0x8f   : > { %v269_v11 = vpop.permute.xlu1 %268  ;;  %v255_v12 = vpop.permute.xlu0 %254 }
  0x90   : > { %v262_v13 = vmul.f32 %v255_v12, %v248_v10 }
  0x92   : > { %v276_v16 = vadd.f32 %v269_v11, %v262_v13 }
  0x93   : > { %v260_v15 = vpop.permute.xlu0 %259  ;;  %v274_v18 = vpop.permute.xlu1 %273 }
  0x94   : > { %v263_v17 = vmul.f32 %v260_v15, %v249_v14  ;;  %v278_v20 = vmax.f32 %v276_v16, 0.0 }
  0x96   : > { %v277_v19 = vadd.f32 %v274_v18, %v263_v17 }
  0x98   : > { %v279_v21 = vmax.f32 %v277_v19, 0.0 }
  0x9a   : > { %v557_v22 = vpack.c.bf16 %v279_v21, %v278_v20 }
  0x9c   : > { %558 = vmatpush3.bf16.msra.mxu0 %v557_v22 }
  0x9f   : > { %547 = vmatmul.mubr.msk.f32.vlgmr.msra.gmra.mrb[0].mxu0 %vm281_vm1, %v280_v23 }
 0x172   : > { %v351_v24 = vpop.f32.mrb[0].mxu0 }
 0x173   : > { %v548_v25 = vpop.f32.mrb[1].mxu0  ;;  %554 = vmatmul.mubr.msk.f32.vlgmr.msra.gmra.mrb[0].mxu1 %vm281_vm1, %v351_v24 }
 0x246   : > { %v426_v26 = vpop.f32.mrb[0].mxu1 }
 0x247   : > { %431 = vst.msk [vmem:[%s239_s14] sm:$0xff] %vm430_vm2, %v426_v26  ;;  %v555_v27 = vpop.f32.mrb[1].mxu1 }
 0x248   : > { %636 = shalt.err (!%p633_p5)
}
 0x249   : > { %s637_s8 = scalar_lea.hbm %s824_s24, 128  ;;  %s641_s11 = scalar_lea.hbm %s876_s5, 256 }
 0x24a   : > { %p638_p6 = scmp.ne.s32.totalorder %s824_s24, %s637_s8  ;;  %p642_p10 = scmp.lt.u32.totalorder %s824_s24, %s876_s5 }
 0x24b   : > { %p643_p11 = scmp.lt.u32.totalorder %s641_s11, %s637_s8  ;;  %p645_p13 = scmp.lt.u32.totalorder %s637_s8, %s824_s24 }
 0x24c   : > { %p639_p7 = pnand %p638_p6, %p778_p4 }
 0x24d   : > { %p644_p12 = por %p643_p11, %p642_p10 }
 0x24e   : > { %p640_p9 = pneg %p639_p7 }
 0x24f   : > { %p646_p0 = por %p645_p13, %p644_p12 }
 0x251   : > { %p647_p1 = pnand %p646_p0, %p640_p9 }
 0x253   : > { %650 = shalt.err (!%p647_p1)
}
 0x254   : > { %562 = dma.vmem_to_hbm [thread:$0]  (%p778_p4), %s826_s15, 128, %s824_s24, %s433_s25  }
 0x255 PF: > { %p568_p2 = scmp.ge.s32.totalorder %s701_s23, 2  ;;  %s459_s14 = sand.u32 1, %s681_s18  }
 0x256   : > { %s460_s16 = scalar_lea.sflag [#allocation3], %s459_s14 }
 0x257   : > { %p565_p3 = pnand %p568_p2, %p785_p8 }
 0x259   : > { %676 = dma.done.wait (!%p565_p3), %s460_s16, 128  }
 0x25a   : > { %678 = vsyncadd (!%p565_p3), %s460_s16, 4294967168  ;;  %s18_s23 = sadd.s32 1, %s701_s23   ;;  %s879_s18 = smov %s685_s19 }
 0x25b   : > { %p15_p5 = scmp.ge.s32.totalorder %s18_s23, 4   ;;  %s880_s19 = smov %s689_s20 }
 0x25c   : > { %s881_s20 = smov %s791_s6  ;;  %s882_s21 = smov %s697_s22 }
 0x25d   : > { %s883_s22 = smov %s885_s26  ;;  %17 = sbr.rel (!%p15_p5) target bundleno = 4 (0x4), region = 75 }
 0x264   :  { %465 = vsyncpa [#allocation3], 1 }
 0x265   :  { %467 = vsyncpa [#allocation3 + $0x1], 1 }

</bundles_post_ra>
